<compile_context>
chip_gen: v5e
topology: v5e:2x2
jax: 0.10.0
libtpu: 0.0.40
codegen_flags: <defaults>
</compile_context>

<pallas_src>
import jax
import jax.numpy as jnp
from jax.experimental import pallas as pl
from jax.experimental.pallas import tpu as pltpu


# --------------------------------- kernel ------------------------------------

def _ddpm_kernel(t_ref, ab_ref, x0_ref, noise_ref, xt_ref):
    """One (sample, row-tile) grid point of the forward diffusion step.

    t_ref:     SMEM (N,)  int32   -- per-sample timestep      (scalar prefetch)
    ab_ref:    SMEM (T,)  float32 -- cumulative alpha-bar LUT  (scalar prefetch)
    x0_ref:    VMEM (TR, 128)     -- clean-image tile (lane-dense)
    noise_ref: VMEM (TR, 128)     -- gaussian-noise tile
    xt_ref:    VMEM (TR, 128)     -- output noisy-image tile
    """
    n = pl.program_id(0)
    ab = ab_ref[t_ref[n]].astype(jnp.float32)      # scalar gather from SMEM
    sqrt_ab = jnp.sqrt(ab)
    sqrt_one_minus_ab = jnp.sqrt(1.0 - ab)

    x0 = x0_ref[...].astype(jnp.float32)
    eps = noise_ref[...].astype(jnp.float32)
    xt_ref[...] = (sqrt_ab * x0 + sqrt_one_minus_ab * eps).astype(xt_ref.dtype)


# -------------------------------- wrapper -------------------------------------

_LANES = 128
_MAX_TILE_ROWS = 2048   # 2048 * 128 * 4B = 1 MiB per operand block


def _row_tile(rows):
    """Largest divisor of `rows` <= _MAX_TILE_ROWS (prefer multiples of 8)."""
    if rows <= _MAX_TILE_ROWS:
        return rows
    best = 1
    for tr in range(_MAX_TILE_ROWS, 0, -1):
        if rows % tr == 0:
            if tr % 8 == 0:
                return tr
            best = max(best, tr)
    return best


def _ddpm_forward_pallas(x0, noise, t, alpha_bars):
    """xt = sqrt(alpha_bar[t]) * x0 + sqrt(1 - alpha_bar[t]) * noise."""
    orig_shape = x0.shape
    N = orig_shape[0]
    chw = 1
    for d in orig_shape[1:]:
        chw *= d

    # Lane-dense view: (N, rows, 128), zero-padding the tail if needed.
    pad = (-chw) % _LANES
    rows = (chw + pad) // _LANES

    x0_f = x0.reshape(N, chw)
    noise_f = noise.reshape(N, chw)
    if pad:
        x0_f = jnp.pad(x0_f, ((0, 0), (0, pad)))
        noise_f = jnp.pad(noise_f, ((0, 0), (0, pad)))
    x0_r = x0_f.reshape(N, rows, _LANES)
    noise_r = noise_f.reshape(N, rows, _LANES)

    tr = _row_tile(rows)
    grid = (N, rows // tr)

    # index_map receives (grid indices..., *scalar-prefetch refs)
    spec = pl.BlockSpec((None, tr, _LANES), lambda n, r, t_s, ab_s: (n, r, 0))

    xt = pl.pallas_call(
        _ddpm_kernel,
        out_shape=jax.ShapeDtypeStruct((N, rows, _LANES), x0.dtype),
        grid_spec=pltpu.PrefetchScalarGridSpec(
            num_scalar_prefetch=2,
            grid=grid,
            in_specs=[spec, spec],
            out_specs=spec,
        ),
        compiler_params=pltpu.CompilerParams(
            dimension_semantics=("parallel", "parallel")),
    )(t.astype(jnp.int32), alpha_bars.astype(jnp.float32), x0_r, noise_r)

    xt = xt.reshape(N, rows * _LANES)
    if pad:
        xt = xt[:, :chw]
    return xt.reshape(orig_shape)


ddpm_forward_pallas = jax.jit(_ddpm_forward_pallas)


class DDPMPallas:
    """JAX/Pallas port of the PyTorch DDPM module's forward pass."""

    def __init__(self, T):
        self.T = T
        self.beta_1 = 0.0001
        self.beta_T = 0.02
        self.betas = jnp.linspace(self.beta_1, self.beta_T, T, dtype=jnp.float32)
        self.alphas = 1.0 - self.betas
        self.alpha_bars = jnp.cumprod(self.alphas)

    def forward(self, x0, t=None, *, key):
        N = x0.shape[0]
        k_t, k_noise = jax.random.split(key)
        if t is None:
            # torch.randint(low=1, high=T, size=(N,))
            t = jax.random.randint(k_t, (N,), 1, self.T, dtype=jnp.int32)
        # torch.randn_like(x0)  (JAX RNG; not bit-identical to PyTorch RNG)
        noise = jax.random.normal(k_noise, x0.shape, dtype=x0.dtype)
        xt = ddpm_forward_pallas(x0, noise, t, self.alpha_bars)
        return xt, t, noise


# ----------------------------------- main --------------------------------------

if __name__ == "__main__":
    T = 1000
    N, C, H, W = 2, 4, 16, 16

    key = jax.random.PRNGKey(0)
    k_x, k_fwd = jax.random.split(key)

    x0 = jax.random.normal(k_x, (N, C, H, W), jnp.float32)

    ddpm = DDPMPallas(T)

    # path 1: t drawn inside forward (matches `t=None` in the PyTorch module)
    xt, t, noise = ddpm.forward(x0, key=k_fwd)
    xt = jax.block_until_ready(xt)

    assert xt.shape == x0.shape, xt.shape
    assert noise.shape == x0.shape, noise.shape
    assert t.shape == (N,), t.shape

    ab = ddpm.alpha_bars[t].reshape(-1, 1, 1, 1)
    xt_ref = jnp.sqrt(ab) * x0 + jnp.sqrt(1.0 - ab) * noise
    err = float(jnp.max(jnp.abs(xt - xt_ref)))
    assert jnp.allclose(xt, xt_ref, atol=1e-5, rtol=1e-5), err

    # path 2: explicit t
    t_fixed = jnp.array([1, T - 1], dtype=jnp.int32)
    xt2, t2, noise2 = ddpm.forward(x0, t_fixed, key=k_fwd)
    xt2 = jax.block_until_ready(xt2)

    ab2 = ddpm.alpha_bars[t_fixed].reshape(-1, 1, 1, 1)
    xt2_ref = jnp.sqrt(ab2) * x0 + jnp.sqrt(1.0 - ab2) * noise2
    err2 = float(jnp.max(jnp.abs(xt2 - xt2_ref)))
    assert jnp.allclose(xt2, xt2_ref, atol=1e-5, rtol=1e-5), err2
    assert bool(jnp.all(t2 == t_fixed))

    print("KERNEL_OK")
</pallas_src>

<mosaic_0001>
module attributes {stable_mosaic.version = 11 : i64} {
  func.func @_ddpm_kernel(%arg0: i32, %arg1: i32, %arg2: memref<2xi32, #tpu.memory_space<smem>>, %arg3: memref<1000xf32, #tpu.memory_space<smem>>, %arg4: memref<1x8x128xf32, #tpu.memory_space<vmem>>, %arg5: memref<1x8x128xf32, #tpu.memory_space<vmem>>, %arg6: memref<1x8x128xf32, #tpu.memory_space<vmem>>) attributes {dimension_semantics = [#tpu.dimension_semantics<parallel>, #tpu.dimension_semantics<parallel>], iteration_bounds = array<i64: 2, 1>, scalar_prefetch = 2 : i64, scratch_operands = 0 : i64, tpu.core_type = #tpu.core_type<tc>, window_params = [{transform_indices = @transform_0, window_bounds = array<i64: 1, 8, 128>}, {transform_indices = @transform_1, window_bounds = array<i64: 1, 8, 128>}, {transform_indices = @transform_2, window_bounds = array<i64: 1, 8, 128>}]} {
    %0 = arith.index_cast %arg0 : i32 to index
    %1 = memref.load %arg2[%0] : memref<2xi32, #tpu.memory_space<smem>>
    %2 = arith.index_cast %1 : i32 to index
    %3 = memref.load %arg3[%2] : memref<1000xf32, #tpu.memory_space<smem>>
    %4 = math.sqrt %3 : f32
    %cst = arith.constant 1.000000e+00 : f32
    %5 = arith.subf %cst, %3 : f32
    %6 = math.sqrt %5 : f32
    %c0 = arith.constant 0 : index
    %c0_0 = arith.constant 0 : index
    %c0_1 = arith.constant 0 : index
    %7 = vector.load %arg4[%c0, %c0_0, %c0_1] : memref<1x8x128xf32, #tpu.memory_space<vmem>>, vector<1x8x128xf32>
    %8 = vector.shape_cast %7 : vector<1x8x128xf32> to vector<8x128xf32>
    %c0_2 = arith.constant 0 : index
    %c0_3 = arith.constant 0 : index
    %c0_4 = arith.constant 0 : index
    %9 = vector.load %arg5[%c0_2, %c0_3, %c0_4] : memref<1x8x128xf32, #tpu.memory_space<vmem>>, vector<1x8x128xf32>
    %10 = vector.shape_cast %9 : vector<1x8x128xf32> to vector<8x128xf32>
    %11 = vector.broadcast %4 : f32 to vector<8x128xf32>
    %12 = arith.mulf %11, %8 : vector<8x128xf32>
    %13 = vector.broadcast %6 : f32 to vector<8x128xf32>
    %14 = arith.mulf %13, %10 : vector<8x128xf32>
    %15 = arith.addf %12, %14 : vector<8x128xf32>
    %c0_5 = arith.constant 0 : index
    %c0_6 = arith.constant 0 : index
    %c0_7 = arith.constant 0 : index
    %16 = vector.load %arg6[%c0_5, %c0_6, %c0_7] : memref<1x8x128xf32, #tpu.memory_space<vmem>>, vector<1x8x128xf32>
    %17 = vector.shape_cast %16 : vector<1x8x128xf32> to vector<8x128xf32>
    %18 = vector.shape_cast %15 : vector<8x128xf32> to vector<1x8x128xf32>
    tpu.vector_store %arg6[%c0_5, %c0_6, %c0_7], %18 {strides = array<i32>} : memref<1x8x128xf32, #tpu.memory_space<vmem>>, vector<1x8x128xf32>,
    return
  }
  func.func @transform_0(%arg0: i32, %arg1: i32, %arg2: memref<2xi32, #tpu.memory_space<smem>>, %arg3: memref<1000xf32, #tpu.memory_space<smem>>) -> (i32, i32, i32) {
    %c0_i32 = arith.constant 0 : i32
    %c0_i32_0 = arith.constant 0 : i32
    return %arg0, %arg1, %c0_i32 : i32, i32, i32
  }
  func.func @transform_1(%arg0: i32, %arg1: i32, %arg2: memref<2xi32, #tpu.memory_space<smem>>, %arg3: memref<1000xf32, #tpu.memory_space<smem>>) -> (i32, i32, i32) {
    %c0_i32 = arith.constant 0 : i32
    %c0_i32_0 = arith.constant 0 : i32
    return %arg0, %arg1, %c0_i32 : i32, i32, i32
  }
  func.func @transform_2(%arg0: i32, %arg1: i32, %arg2: memref<2xi32, #tpu.memory_space<smem>>, %arg3: memref<1000xf32, #tpu.memory_space<smem>>) -> (i32, i32, i32) {
    %c0_i32 = arith.constant 0 : i32
    %c0_i32_0 = arith.constant 0 : i32
    return %arg0, %arg1, %c0_i32 : i32, i32, i32
  }
}

</mosaic_0001>

<bundles_post_ra>
// kernel: _ddpm_forward_pallas.1
= control target key start
LH: loop header
LB: loop body
LE: loop exit
PB: predicated region body
PF: predicated region fallthrough
CT: control target
= control target key end

     0   :  { %s435_s21 = smov [#allocation3]   ;;  %s436_s22 = smov [#allocation4]   ;;  %s509_s0 = inlined_call_operand.vmem [shape: s32[2], index: 0, kind: input, shape index: {}]   ;;  %s510_s2 = inlined_call_operand.vmem [shape: f32[2,8,128], index: 2, kind: input, shape index: {}]   ;;  %s511_s3 = inlined_call_operand.vmem [shape: f32[2,8,128], index: 3, kind: input, shape index: {}]   ;;  %s512_s4 = inlined_call_operand.vmem [shape: f32[2,8,128], index: 4, kind: output, shape index: {}]   ;;  %s513_s1 = inlined_call_operand.vmem [shape: f32[1000], index: 1, kind: input, shape index: {}]  }
   0x1   :  { %s10_s17 = sshll.u32 %s509_s0, 4  ;;  %s15_s20 = sshll.u32 %s513_s1, 4  ;;  %s11_s17 = int_to_ptr.vmem [resolvable:$true] %s10_s17  ;;  %s16_s20 = int_to_ptr.vmem [resolvable:$true] %s15_s20 }
   0x2   :  { %13 = dma.vmem_to_smem %s11_s17, 16, %s435_s21, [#allocation2] }
   0x3   :  { %18 = dma.vmem_to_smem %s16_s20, 128, %s436_s22, [#allocation2] }
   0x4   :  { %421 = dma.done.wait [#allocation2], 144 }
   0x5   :  { %422 = vsyncadd [#allocation2], 4294967152 }
   0x6   :  { %21 = sfence }
   0x7   :  { %s468_s23 = smov 0   ;;  %s470_s24 = smov 0  }
   0x8   :  { %s472_s25 = smov 0  }
   0x9 LB: > { %s39_s0 = sadd.s32 1, %s429_s24  ;;  %p345_p0 = scmp.ge.s32.totalorder %s433_s25, 1  ;;  %s433_s25 = sphi %s472_s25, %s27_s25   ;;  %s429_s24 = sphi %s470_s24, %s515_s24   ;;  %s425_s23 = sphi %s468_s23, %s514_s23  }
   0xa   : > { %p41_p1 = scmp.ge.s32.totalorder %s39_s0, 2  ;;  %p159_p2 = scmp.lt.s32.totalorder %s433_s25, 3 }
   0xc   : > { %s517_s0 = smov (%p41_p1, %s39_s0), 0  ;;  %p160_p3 = pnand %p345_p0, %p159_p2 }
   0xd   : > { %s213_s1 = sld [smem:[#allocation3 + %s425_s23]] (!%p160_p3)  ;;  %p192_p4 = scmp.lt.s32.totalorder (!%p160_p3), %s425_s23, 1 }
   0xe   : > { %163 = sbr.rel (%p160_p3) target bundleno = 105 (0x69), region = 28 }
  0x13   : > { %s214_s26 = sld [smem:[#allocation4 + %s213_s1]]  ;;  %s519_s23 = smov (!%p192_p4, %s425_s23), 1 }
  0x14   : > { %s346_s28 = sshll.u32 %s519_s23, 3 }
  0x15   : > { %s198_s5 = scalar_lea.vmem %s510_s2, %s346_s28  ;;  %s205_s8 = scalar_lea.vmem %s511_s3, %s346_s28 }
  0x16   : > { %v244_v22 = vld [vmem:[%s198_s5] sm:$0xff]  ;;  %s212_s13 = scalar_lea.vmem %s512_s4, %s346_s28 }
  0x17   : > { %v245_v24 = vld [vmem:[%s205_s8] sm:$0xff] }
  0x19   : > { %v215_v0 = vstv %s214_s26  ;;  %s229_s27 = ssub.f32 1.0, %s214_s26 }
  0x1a   : > { %381 = vrsqrt.f32 %v215_v0  ;;  %vm223_vm0 = vcmp.eq.f32.partialorder %v215_v0, inf  ;;  %v226_v13 = vand.u32 2147483648, %v215_v0  ;;  %vm225_vm1 = vcmp.eq.f32.partialorder %v215_v0, 0.0 }
  0x1b   : > { %v230_v1 = vstv %s229_s27 }
  0x1c   : > { %383 = vrsqrt.f32 %v230_v1  ;;  %vm238_vm2 = vcmp.eq.f32.partialorder %v230_v1, inf  ;;  %v241_v16 = vand.u32 2147483648, %v230_v1  ;;  %vm240_vm3 = vcmp.eq.f32.partialorder %v230_v1, 0.0 }
  0x20   : > { %v382_v2 = vpop.eup %381 }
  0x21   : > { %v217_v3 = vmul.f32 %v382_v2, %v215_v0 }
  0x22   : > { %v384_v4 = vpop.eup %383 }
  0x23   : > { %v218_v5 = vmul.f32 %v382_v2, %v217_v3  ;;  %v232_v6 = vmul.f32 %v384_v4, %v230_v1 }
  0x25   : > { %v219_v7 = vmul.f32 0.5, %v218_v5  ;;  %v233_v8 = vmul.f32 %v384_v4, %v232_v6 }
  0x27   : > { %v220_v9 = vsub.f32 1.5, %v219_v7  ;;  %v234_v10 = vmul.f32 0.5, %v233_v8 }
  0x29   : > { %v221_v11 = vmul.f32 %v382_v2, %v220_v9  ;;  %v235_v12 = vsub.f32 1.5, %v234_v10 }
  0x2b   : > { %v222_v14 = vmul.f32 %v221_v11, %v215_v0  ;;  %v236_v15 = vmul.f32 %v384_v4, %v235_v12 }
  0x2d   : > { %v224_v17 = vsel %vm223_vm0, %v215_v0, %v222_v14  ;;  %v237_v18 = vmul.f32 %v236_v15, %v230_v1 }
  0x2e   : > { %v227_v19 = vsel %vm225_vm1, %v226_v13, %v224_v17 }
  0x2f   : > { %351 = vpush %v227_v19  ;;  %v239_v20 = vsel %vm238_vm2, %v230_v1, %v237_v18 }
  0x30   : > { %v242_v21 = vsel %vm240_vm3, %v241_v16, %v239_v20 }
  0x31   : > { %353 = vpush %v242_v21 }
  0x60   : > { %s352_s9 = spop %351 }
  0x61   : > { %v246_v23 = vstv %s352_s9 }
  0x62   : > { %v247_v25 = vmul.f32 %v246_v23, %v244_v22  ;;  %s354_s10 = spop %353 }
  0x63   : > { %v248_v26 = vstv %s354_s10 }
  0x64   : > { %v249_v27 = vmul.f32 %v248_v26, %v245_v24 }
  0x66   : > { %v250_v28 = vadd.f32 %v249_v27, %v247_v25 }
  0x68   : > { %251 = vst [vmem:[%s212_s13] sm:$0xff] %v250_v28 }
  0x69 PF: > { %s27_s25 = sadd.s32 1, %s433_s25   ;;  %s514_s23 = smov %s429_s24 }
  0x6a   : > { %p24_p5 = scmp.ge.s32.totalorder %s27_s25, 4   ;;  %s515_s24 = smov %s517_s0 }
  0x6c   :  { %26 = sbr.rel (!%p24_p5) target bundleno = 9 (0x9), region = 61 }

</bundles_post_ra>
